<compile_context>
chip_gen: v5e
topology: v5e:2x2
jax: 0.10.0
libtpu: 0.0.40
codegen_flags: <defaults>
</compile_context>

<pallas_src>
import jax
import jax.numpy as jnp
from jax.experimental import pallas as pl
from jax.experimental.pallas import tpu as pltpu

_LANE = 128
_SUBLANE = 8


def _round_up(x, m):
    return (x + m - 1) // m * m


def _vmem_budget():
    """Return (tile_budget_bytes, vmem_limit_bytes, assume_two_tensorcores).

    128 MiB VMEM parts (v5e/v6e, single TensorCore) -> large budget, no split.
    64 MiB parts (v7x, 2 TCs) or unknown -> conservative budget + megacore split.
    """
    cap = None
    try:
        info = pltpu.get_tpu_info()
        cap = int(getattr(info, "vmem_capacity_bytes", 0)) or None
    except Exception:
        cap = None
    if cap is not None and cap >= 100 * 1024 * 1024:
        return 96 * 1024 * 1024, 100 * 1024 * 1024, False
    return 36 * 1024 * 1024, 48 * 1024 * 1024, True


def _choose_tb(B, K1, D, itemsize, budget, two_tc):
    """Largest lane-aligned batch tile whose double-buffered tiles fit `budget`.

    Batch is in the lane dimension, so the per-batch-column VMEM footprint is
    the *dense* (K1*D + D) embedding bytes plus the 8-sublane-padded f32
    output column (no 8x128 padding blow-up).
    """
    sub = _SUBLANE if itemsize >= 4 else (32 // itemsize)  # bf16 packs 16 rows/tile
    d_pad = _round_up(D, sub)
    per_col = 2 * (K1 * d_pad + d_pad) * itemsize + 2 * _round_up(K1, _SUBLANE) * 4
    cap = max(_LANE, (budget // per_col) // _LANE * _LANE)
    tb = min(cap, _round_up(B, _LANE))
    if two_tc and B >= 4 * _LANE:
        # v7x megacore: >=4 grid steps so each TensorCore keeps >=2 iterations
        # to overlap DMA with compute.
        tb = min(tb, _round_up(pl.cdiv(B, 4), _LANE))
    return tb


def _fused_bpr_kernel(u_ref, ji_ref, out_ref):
    """One batch tile of fused BPR scoring with batch in the lane dimension.

    u_ref  : (D, TB)      user embeddings (batch minor / lane-dense)
    ji_ref : (K1, D, TB)  item embeddings; k=0 is the positive, k>=1 negatives
    out_ref: (K1, TB)     scores[k, b] = sum_d ji[k, d, b] * u[d, b]
    """
    u = u_ref[...]
    ji = ji_ref[...]
    # Multiply in the native dtype (bf16 VALU on v6e/v7x; Mosaic upcasts on
    # v5e where there is no bf16 VPU); accumulate the D reduction in f32.
    prod = ji * u[None, :, :]
    if prod.dtype != jnp.float32:
        prod = prod.astype(jnp.float32)
    out_ref[...] = jnp.sum(prod, axis=1)          # dense sublane reduce over D


def fused_bpr_scores(u, ji, *, tb=None):
    """u:(B, D), ji:(B, K+1, D) -> scores:(B, K+1) float32."""
    B, D = u.shape
    Bj, K1, Dj = ji.shape
    assert Bj == B and Dj == D
    itemsize = jnp.dtype(u.dtype).itemsize

    budget, vmem_limit, two_tc = _vmem_budget()
    if tb is None:
        tb = _choose_tb(B, K1, D, itemsize, budget, two_tc)

    # Batch-in-lanes layout (pure layout plumbing; fused with the surrounding
    # gather under jit): lane-dense vregs and an unmasked lane-dense store.
    u_t = u.T                                     # (D, B)
    ji_t = jnp.transpose(ji, (1, 2, 0))           # (K+1, D, B)

    # Ragged batch tail handled by a masked partial trailing block -- no
    # HBM-materializing jnp.pad of ji, and no wrapper-side slice needed.
    grid = (pl.cdiv(B, tb),)

    cost = pl.CostEstimate(
        flops=2 * B * K1 * D,
        transcendentals=0,
        bytes_accessed=(B * K1 * D + B * D) * itemsize + B * K1 * 4,
    )
    scores_t = pl.pallas_call(
        _fused_bpr_kernel,
        out_shape=jax.ShapeDtypeStruct((K1, B), jnp.float32),
        grid=grid,
        in_specs=[
            pl.BlockSpec((D, tb), lambda b: (0, b)),
            pl.BlockSpec((K1, D, tb), lambda b: (0, 0, b)),
        ],
        out_specs=pl.BlockSpec((K1, tb), lambda b: (0, b)),
        compiler_params=pltpu.CompilerParams(
            dimension_semantics=("parallel",),
            vmem_limit_bytes=vmem_limit,
        ),
        cost_estimate=cost,
    )(u_t, ji_t)
    return scores_t.T                             # (B, K+1)


@jax.jit
def _bpr_forward(all_users, all_items, batch_user, batch_pos_item, batch_neg_item):
    u = all_users[batch_user]                                     # (B, D)
    # Fold the positive item in as "negative index 0": one gather, one fused
    # kernel output instead of separate pos/neg passes.
    pn_items = jnp.concatenate(
        [batch_pos_item[:, None], batch_neg_item], axis=1)        # (B, K+1)
    ji = all_items[pn_items]                                      # (B, K+1, D)
    scores = fused_bpr_scores(u, ji)                              # (B, K+1)
    return scores[:, :1], scores[:, 1:]


@jax.jit
def _multi_item_scores(all_users, all_items, batch_user, batch_items):
    u = all_users[batch_user]                                     # (B, D)
    i = all_items[batch_items]                                    # (B, k, D)
    return fused_bpr_scores(u, i)                                 # (B, k)


class BaseGCNPallas:
    """Minimal JAX/Pallas port of BaseGCN's forward pass."""

    def __init__(self, num_users, num_items, dim, key):
        ku, ki = jax.random.split(key)
        # deterministic synthetic embedding tables (stand-in for learned params)
        self.user_emb = 0.1 * jax.random.normal(ku, (num_users, dim), jnp.float32)
        self.item_emb = 0.1 * jax.random.normal(ki, (num_items, dim), jnp.float32)
        self.num_users = num_users
        self.num_items = num_items
        self.dim = dim

    def computer(self):
        # Abstract (NotImplementedError) in the reference; identity propagation
        # stands in so the scoring head can be exercised.
        return self.user_emb, self.item_emb

    def forward(self, batch_user, batch_pos_item, batch_neg_item):
        all_users, all_items = self.computer()
        return _bpr_forward(all_users, all_items,
                            batch_user, batch_pos_item, batch_neg_item)

    def forward_multi_items(self, batch_user, batch_items):
        all_users, all_items = self.computer()
        return _multi_item_scores(all_users, all_items, batch_user, batch_items)

    def get_loss(self, output):
        pos_score, neg_score = output
        return -jax.nn.log_sigmoid(pos_score - neg_score).sum()


if __name__ == "__main__":
    key = jax.random.PRNGKey(0)
    k_model, k_u, k_p, k_n = jax.random.split(key, 4)

    NUM_USERS, NUM_ITEMS, DIM = 32, 48, 32
    B, K = 8, 4

    model = BaseGCNPallas(NUM_USERS, NUM_ITEMS, DIM, k_model)

    batch_user = jax.random.randint(k_u, (B,), 0, NUM_USERS, dtype=jnp.int32)
    batch_pos_item = jax.random.randint(k_p, (B,), 0, NUM_ITEMS, dtype=jnp.int32)
    batch_neg_item = jax.random.randint(k_n, (B, K), 0, NUM_ITEMS, dtype=jnp.int32)

    pos_score, neg_score = model.forward(batch_user, batch_pos_item, batch_neg_item)
    jax.block_until_ready((pos_score, neg_score))

    # reference check (plain JAX), mirrors the PyTorch semantics exactly
    all_users, all_items = model.computer()
    u = all_users[batch_user]
    i = all_items[batch_pos_item]
    j = all_items[batch_neg_item]
    pos_ref = jnp.sum(u * i, axis=1, keepdims=True)
    neg_ref = jnp.einsum("bkd,bd->bk", j, u)
    assert pos_score.shape == (B, 1) and neg_score.shape == (B, K)
    assert jnp.allclose(pos_score, pos_ref, atol=1e-5)
    assert jnp.allclose(neg_score, neg_ref, atol=1e-5)

    # forward_multi_items reuses the same fused kernel
    multi = model.forward_multi_items(batch_user, batch_neg_item)
    assert multi.shape == (B, K)
    assert jnp.allclose(multi, neg_ref, atol=1e-5)

    # exercise the loss too (plain JAX, as in the reference module)
    loss = model.get_loss((pos_score, neg_score))
    jax.block_until_ready(loss)

    print("KERNEL_OK")
</pallas_src>

<mosaic_0001>
module attributes {stable_mosaic.version = 11 : i64} {
  func.func @_fused_bpr_kernel(%arg0: i32, %arg1: memref<32x128xf32, #tpu.memory_space<vmem>>, %arg2: memref<5x32x128xf32, #tpu.memory_space<vmem>>, %arg3: memref<5x128xf32, #tpu.memory_space<vmem>>) attributes {dimension_semantics = [#tpu.dimension_semantics<parallel>], iteration_bounds = array<i64: 1>, scalar_prefetch = 0 : i64, scratch_operands = 0 : i64, tpu.core_type = #tpu.core_type<tc>, window_params = [{transform_indices = @transform_0, window_bounds = array<i64: 32, 128>}, {transform_indices = @transform_1, window_bounds = array<i64: 5, 32, 128>}, {transform_indices = @transform_2, window_bounds = array<i64: 5, 128>}]} {
    %c0 = arith.constant 0 : index
    %c0_0 = arith.constant 0 : index
    %0 = vector.load %arg1[%c0, %c0_0] : memref<32x128xf32, #tpu.memory_space<vmem>>, vector<32x128xf32>
    %c0_1 = arith.constant 0 : index
    %c0_2 = arith.constant 0 : index
    %c0_3 = arith.constant 0 : index
    %1 = vector.load %arg2[%c0_1, %c0_2, %c0_3] : memref<5x32x128xf32, #tpu.memory_space<vmem>>, vector<5x32x128xf32>
    %2 = vector.shape_cast %0 : vector<32x128xf32> to vector<1x32x128xf32>
    %3 = vector.broadcast %2 : vector<1x32x128xf32> to vector<5x32x128xf32>
    %4 = arith.mulf %1, %3 : vector<5x32x128xf32>
    %cst = arith.constant dense<0.000000e+00> : vector<5x128xf32>
    %5 = vector.multi_reduction <add>, %4, %cst [1] : vector<5x32x128xf32> to vector<5x128xf32>
    %c0_4 = arith.constant 0 : index
    %c0_5 = arith.constant 0 : index
    %6 = vector.load %arg3[%c0_4, %c0_5] : memref<5x128xf32, #tpu.memory_space<vmem>>, vector<5x128xf32>
    tpu.vector_store %arg3[%c0_4, %c0_5], %5 {strides = array<i32>} : memref<5x128xf32, #tpu.memory_space<vmem>>, vector<5x128xf32>,
    return
  }
  func.func @transform_0(%arg0: i32) -> (i32, i32) {
    %c0_i32 = arith.constant 0 : i32
    %c0_i32_0 = arith.constant 0 : i32
    return %c0_i32, %arg0 : i32, i32
  }
  func.func @transform_1(%arg0: i32) -> (i32, i32, i32) {
    %c0_i32 = arith.constant 0 : i32
    %c0_i32_0 = arith.constant 0 : i32
    %c0_i32_1 = arith.constant 0 : i32
    return %c0_i32, %c0_i32_0, %arg0 : i32, i32, i32
  }
  func.func @transform_2(%arg0: i32) -> (i32, i32) {
    %c0_i32 = arith.constant 0 : i32
    %c0_i32_0 = arith.constant 0 : i32
    return %c0_i32, %arg0 : i32, i32
  }
}

</mosaic_0001>

<bundles_post_ra>
// kernel: _bpr_forward.1
= control target key start
LH: loop header
LB: loop body
LE: loop exit
PB: predicated region body
PF: predicated region fallthrough
CT: control target
= control target key end

     0   :  { %vm105_vm0 = vcmask 1041409   ;;  %vm107_vm1 = vcmask 1042434   ;;  %vm109_vm2 = vcmask 1043459   ;;  %vm111_vm3 = vcmask 1044484   ;;  %s209_s0 = inlined_call_operand.vmem [shape: f32[32,8], index: 0, kind: input, shape index: {}]   ;;  %s210_s1 = inlined_call_operand.vmem [shape: f32[5,32,8], index: 1, kind: input, shape index: {}]   ;;  %s211_s2 = inlined_call_operand.vmem [shape: f32[5,8], index: 2, kind: output, shape index: {}]  }
   0x1   :  { %v11_v0 = vld [vmem:[%s209_s0] sm:$0xff]  ;;  %v12_v1 = vld [vmem:[%s209_s0 + $0x8] sm:$0xff]  ;;  %v13_v2 = vld [vmem:[%s209_s0 + $0x10] sm:$0xff] }
   0x2   :  { %v14_v3 = vld [vmem:[%s209_s0 + $0x18] sm:$0xff]  ;;  %v15_v4 = vld [vmem:[%s210_s1] sm:$0xff]  ;;  %v16_v5 = vld [vmem:[%s210_s1 + $0x8] sm:$0xff] }
   0x3   :  { %v17_v6 = vld [vmem:[%s210_s1 + $0x10] sm:$0xff]  ;;  %v18_v7 = vld [vmem:[%s210_s1 + $0x18] sm:$0xff]  ;;  %v19_v8 = vld [vmem:[%s210_s1 + $0x20] sm:$0xff]  ;;  %v35_v9 = vmul.f32 %v15_v4, %v11_v0  ;;  %v36_v10 = vmul.f32 %v16_v5, %v12_v1 }
   0x4   :  { %v20_v11 = vld [vmem:[%s210_s1 + $0x28] sm:$0xff]  ;;  %v21_v12 = vld [vmem:[%s210_s1 + $0x30] sm:$0xff]  ;;  %v22_v13 = vld [vmem:[%s210_s1 + $0x38] sm:$0xff]  ;;  %v37_v14 = vmul.f32 %v17_v6, %v13_v2  ;;  %v39_v15 = vmul.f32 %v19_v8, %v11_v0  ;;  %v38_v19 = vmul.f32 %v18_v7, %v14_v3 }
   0x5   :  { %v23_v16 = vld [vmem:[%s210_s1 + $0x40] sm:$0xff]  ;;  %v24_v17 = vld [vmem:[%s210_s1 + $0x48] sm:$0xff]  ;;  %v25_v18 = vld [vmem:[%s210_s1 + $0x50] sm:$0xff]  ;;  %v40_v20 = vmul.f32 %v20_v11, %v12_v1  ;;  %v55_v21 = vadd.f32 %v36_v10, %v35_v9  ;;  %v41_v25 = vmul.f32 %v21_v12, %v13_v2  ;;  %v42_v31 = vmul.f32 %v22_v13, %v14_v3 }
   0x6   :  { %v26_v22 = vld [vmem:[%s210_s1 + $0x58] sm:$0xff]  ;;  %v27_v23 = vld [vmem:[%s210_s1 + $0x60] sm:$0xff]  ;;  %v28_v24 = vld [vmem:[%s210_s1 + $0x68] sm:$0xff]  ;;  %v43_v26 = vmul.f32 %v23_v16, %v11_v0  ;;  %v44_v27 = vmul.f32 %v24_v17, %v12_v1  ;;  %v45_v38 = vmul.f32 %v25_v18, %v13_v2 }
   0x7   :  { %v29_v28 = vld [vmem:[%s210_s1 + $0x70] sm:$0xff]  ;;  %v30_v29 = vld [vmem:[%s210_s1 + $0x78] sm:$0xff]  ;;  %v31_v30 = vld [vmem:[%s210_s1 + $0x80] sm:$0xff]  ;;  %v47_v32 = vmul.f32 %v27_v23, %v11_v0  ;;  %v48_v33 = vmul.f32 %v28_v24, %v12_v1  ;;  %v56_v34 = vadd.f32 %v55_v21, %v37_v14  ;;  %v64_v41 = vadd.f32 %v40_v20, %v39_v15 }
   0x8   :  { %v32_v35 = vld [vmem:[%s210_s1 + $0x88] sm:$0xff]  ;;  %v33_v36 = vld [vmem:[%s210_s1 + $0x90] sm:$0xff]  ;;  %v34_v37 = vld [vmem:[%s210_s1 + $0x98] sm:$0xff]  ;;  %v49_v39 = vmul.f32 %v29_v28, %v13_v2  ;;  %v51_v40 = vmul.f32 %v31_v30, %v11_v0  ;;  %v46_v42 = vmul.f32 %v26_v22, %v14_v3  ;;  %v50_v46 = vmul.f32 %v30_v29, %v14_v3 }
   0x9   :  { %v52_v43 = vmul.f32 %v32_v35, %v12_v1  ;;  %v53_v44 = vmul.f32 %v33_v36, %v13_v2  ;;  %v57_v45 = vadd.f32 %v56_v34, %v38_v19  ;;  %v65_v47 = vadd.f32 %v64_v41, %v41_v25 }
   0xa   :  { %v73_v48 = vadd.f32 %v44_v27, %v43_v26  ;;  %v82_v49 = vadd.f32 %v48_v33, %v47_v32  ;;  %v54_v50 = vmul.f32 %v34_v37, %v14_v3 }
   0xb   :  { %v58_v51 = vrot.slane %v57_v45, 4  ;;  %v91_v52 = vadd.f32 %v52_v43, %v51_v40  ;;  %v66_v53 = vadd.f32 %v65_v47, %v42_v31 }
   0xc   :  { %v74_v54 = vadd.f32 %v73_v48, %v45_v38  ;;  %v83_v55 = vadd.f32 %v82_v49, %v49_v39 }
   0xd   :  { %v59_v56 = vadd.f32 %v58_v51, %v57_v45  ;;  %v92_v57 = vadd.f32 %v91_v52, %v53_v44  ;;  %v67_v58 = vrot.slane %v66_v53, 4 }
   0xe   :  { %v75_v59 = vadd.f32 %v74_v54, %v46_v42  ;;  %v84_v60 = vadd.f32 %v83_v55, %v50_v46 }
   0xf   :  { %v60_v61 = vrot.slane %v59_v56, 2  ;;  %v93_v62 = vadd.f32 %v92_v57, %v54_v50  ;;  %v68_v63 = vadd.f32 %v67_v58, %v66_v53 }
  0x10   :  { %v76_v0 = vrot.slane %v75_v59, 4  ;;  %v85_v1 = vrot.slane %v84_v60, 4 }
  0x11   :  { %v61_v2 = vadd.f32 %v60_v61, %v59_v56  ;;  %v94_v4 = vrot.slane %v93_v62, 4  ;;  %v69_v5 = vrot.slane %v68_v63, 2 }
  0x12   :  { %v77_v6 = vadd.f32 %v76_v0, %v75_v59  ;;  %v86_v3 = vadd.f32 %v85_v1, %v84_v60 }
  0x13   :  { %v62_v7 = vrot.slane %v61_v2, 1  ;;  %v95_v8 = vadd.f32 %v94_v4, %v93_v62  ;;  %v70_v9 = vadd.f32 %v69_v5, %v68_v63 }
  0x14   :  { %v78_v10 = vrot.slane %v77_v6, 2  ;;  %v87_v11 = vrot.slane %v86_v3, 2 }
  0x15   :  { %v96_v12 = vrot.slane %v95_v8, 2  ;;  %v63_v13 = vadd.f32 %v62_v7, %v61_v2  ;;  %v71_v14 = vrot.slane %v70_v9, 1 }
  0x16   :  { %v79_v15 = vadd.f32 %v78_v10, %v77_v6  ;;  %v88_v16 = vadd.f32 %v87_v11, %v86_v3 }
  0x17   :  { %v97_v17 = vadd.f32 %v96_v12, %v95_v8  ;;  %v72_v18 = vadd.f32 %v71_v14, %v70_v9 }
  0x18   :  { %v80_v19 = vrot.slane %v79_v15, 1  ;;  %v89_v20 = vrot.slane %v88_v16, 1 }
  0x19   :  { %v98_v21 = vrot.slane %v97_v17, 1  ;;  %v106_v24 = vsel %vm105_vm0, %v72_v18, %v63_v13 }
  0x1a   :  { %v81_v22 = vadd.f32 %v80_v19, %v79_v15  ;;  %v90_v23 = vadd.f32 %v89_v20, %v88_v16 }
  0x1b   :  { %v99_v25 = vadd.f32 %v98_v21, %v97_v17 }
  0x1c   :  { %v108_v26 = vsel %vm107_vm1, %v81_v22, %v106_v24 }
  0x1d   :  { %v110_v27 = vsel %vm109_vm2, %v90_v23, %v108_v26 }
  0x1e   :  { %v112_v28 = vsel %vm111_vm3, %v99_v25, %v110_v27 }
  0x1f   :  { %114 = vst [vmem:[%s211_s2] sm:$0x1f] %v112_v28 }

</bundles_post_ra>
